<compile_context>
chip_gen: v5e
topology: v5e:2x2
jax: 0.10.0
libtpu: 0.0.40
codegen_flags: <defaults>
</compile_context>

<pallas_src>
import functools
import math

import jax
import jax.numpy as jnp
from jax.experimental import pallas as pl
from jax.experimental.pallas import tpu as pltpu


def _round_up(x, m):
    return ((x + m - 1) // m) * m


def _pick_batch_tile(batch, cap=1024):
    """Lane-dense batch tile (multiple of 128), capped for scoped VMEM, >=2 grid steps
    whenever the (padded) batch exceeds one tile so both v7x TensorCores get work."""
    bp = _round_up(max(batch, 1), 128)
    if bp <= 128:
        return 128
    return min(cap, _round_up(bp // 2, 128))


# ----------------------------------------------------------------------------
# Fused kernel.  Transposed layout: activations are (features, batch_tile),
# i.e. the batch lives on the lane axis.
# ----------------------------------------------------------------------------
def _layer_norm_cols(h, gamma, beta, eps=1e-5):
    # Normalize each column (= one example) over the feature axis (axis 0),
    # matching PyTorch nn.LayerNorm(size) applied to (B, size) rows.
    mu = jnp.mean(h, axis=0, keepdims=True)
    d = h - mu
    var = jnp.mean(d * d, axis=0, keepdims=True)
    return d * jax.lax.rsqrt(var + eps) * gamma + beta


def _fnn_kernel(conts_ref, cates_ref, tbl_ref,
                w1_ref, b1_ref, g1_ref, be1_ref,
                w2_ref, b2_ref, g2_ref, be2_ref,
                wo_ref, bo_ref, out_ref, x_sc,
                *, cont_field, cate_field, emb_dim, vocab):
    tb = out_ref.shape[-1]

    conts = conts_ref[...]                      # (cont_field, tb)  f32
    cate_idx = cates_ref[...]                   # (cate_field, tb)  i32
    tbl = tbl_ref[...]                          # (D, vocab)        f32
    iota = jax.lax.broadcasted_iota(jnp.int32, (vocab, tb), 0)

    # --- Build the (N0, tb) first-layer input tile directly in VMEM scratch ---
    # Continuous fields: table row c scaled by the continuous value (outer product).
    for c in range(cont_field):
        piece = tbl[:, c:c + 1] * conts[c:c + 1, :]                       # (D, tb)
        x_sc[c * emb_dim:(c + 1) * emb_dim, :] = piece

    # Categorical fields: embedding gather as an exact one-hot MXU matmul.
    for f in range(cate_field):
        onehot = (iota == cate_idx[f:f + 1, :]).astype(jnp.float32)       # (vocab, tb)
        piece = jnp.dot(tbl, onehot, preferred_element_type=jnp.float32)  # (D, tb)
        r0 = (cont_field + f) * emb_dim
        x_sc[r0:r0 + emb_dim, :] = piece

    # --- MLP (matmul operands in bf16, elementwise math in f32) ---
    x = x_sc[...].astype(w1_ref.dtype)                                    # (N0, tb) bf16
    h = jnp.dot(w1_ref[...], x, preferred_element_type=jnp.float32) + b1_ref[...]
    h = jnp.maximum(_layer_norm_cols(h, g1_ref[...], be1_ref[...]), 0.0)  # (H1, tb)
    h = jnp.dot(w2_ref[...], h.astype(w2_ref.dtype),
                preferred_element_type=jnp.float32) + b2_ref[...]
    h = jnp.maximum(_layer_norm_cols(h, g2_ref[...], be2_ref[...]), 0.0)  # (H2, tb)

    # Output layer (H2 -> 1): VPU multiply + sublane reduce, no 1-wide MXU matmul.
    logit = jnp.sum(h * wo_ref[...], axis=0, keepdims=True) + bo_ref[...]  # (1, tb)
    out_ref[...] = jax.nn.sigmoid(logit)


# ----------------------------------------------------------------------------
# Wrapper: only tiny per-example streams (conts, cates) are padded / transposed
# on the XLA side; no x slab is ever written to HBM.
# ----------------------------------------------------------------------------
def fnn_forward(conts, cates, combs, params, cont_field, cate_field, *, batch_tile=None):
    del combs  # unused by the reference forward()
    B = conts.shape[0]
    vocab, D = params["emb"].shape
    H2 = params["w2"].shape[0]
    N0 = D * (cont_field + cate_field)

    tb = batch_tile if batch_tile is not None else _pick_batch_tile(B)
    Bp = _round_up(B, tb)
    grid = (Bp // tb,)

    # Tiny streams: (B, 3) and (B, 5) -> padding/transposing them is negligible traffic.
    conts_t = jnp.pad(conts.astype(jnp.float32).reshape(B, cont_field),
                      ((0, Bp - B), (0, 0))).T                            # (cont_field, Bp)
    cates_t = jnp.pad(cates.astype(jnp.int32).reshape(B, cate_field),
                      ((0, Bp - B), (0, 0))).T                            # (cate_field, Bp)

    tbl_t = params["emb"].astype(jnp.float32).T                           # (D, vocab)
    w1 = params["w1"].astype(jnp.bfloat16)
    w2 = params["w2"].astype(jnp.bfloat16)
    wo_col = params["wo"].reshape(1, H2).T.astype(jnp.float32)            # (H2, 1)

    resident_args = (tbl_t,
                     w1, params["b1"], params["g1"], params["be1"],
                     w2, params["b2"], params["g2"], params["be2"],
                     wo_col, params["bo"])

    def resident(a):
        # Constant block index -> stays resident in VMEM across grid steps.
        return pl.BlockSpec(a.shape, lambda i: (0, 0))

    kernel = functools.partial(_fnn_kernel, cont_field=cont_field,
                               cate_field=cate_field, emb_dim=D, vocab=vocab)

    out = pl.pallas_call(
        kernel,
        out_shape=jax.ShapeDtypeStruct((1, Bp), jnp.float32),
        grid=grid,
        in_specs=[pl.BlockSpec((cont_field, tb), lambda i: (0, i)),
                  pl.BlockSpec((cate_field, tb), lambda i: (0, i))]
                 + [resident(a) for a in resident_args],
        out_specs=pl.BlockSpec((1, tb), lambda i: (0, i)),
        scratch_shapes=[pltpu.VMEM((N0, tb), jnp.float32)],
        compiler_params=pltpu.CompilerParams(dimension_semantics=("parallel",)),
    )(conts_t, cates_t, *resident_args)

    return out[0, :B].reshape(B, 1)


# ----------------------------------------------------------------------------
# Deterministic parameter construction (mirrors the PyTorch __init__).
# Linear weights use the PyTorch (out_features, in_features) layout.
# ----------------------------------------------------------------------------
def make_params(key, cont_field, cate_field, vocab, emb_dim, hidden_dims):
    fields = cont_field + cate_field
    n0 = emb_dim * fields
    h1, h2 = hidden_dims
    ks = jax.random.split(key, 8)

    def xavier(k, fan_out, fan_in):
        bound = math.sqrt(6.0 / (fan_in + fan_out))
        return jax.random.uniform(k, (fan_out, fan_in), jnp.float32, -bound, bound)

    def linear_bias(k, fan_in, n):
        b = 1.0 / math.sqrt(fan_in)
        return jax.random.uniform(k, (n, 1), jnp.float32, -b, b)

    # nn.Embedding init per the reference: uniform(-a, a), a = np.square(3/(cate_field*D)).
    a = (3.0 / (cate_field * emb_dim)) ** 2
    emb = jax.random.uniform(ks[0], (vocab, emb_dim), jnp.float32, -a, a)

    return {
        "emb": emb,
        "w1": xavier(ks[1], h1, n0),
        "b1": linear_bias(ks[2], n0, h1),
        "g1": jnp.ones((h1, 1), jnp.float32),
        "be1": jnp.zeros((h1, 1), jnp.float32),
        "w2": xavier(ks[3], h2, h1),
        "b2": linear_bias(ks[4], h1, h2),
        "g2": jnp.ones((h2, 1), jnp.float32),
        "be2": jnp.zeros((h2, 1), jnp.float32),
        "wo": xavier(ks[5], 1, h2),
        "bo": linear_bias(ks[6], h2, 1),
    }


# Pure-JAX f32 reference (mirrors the PyTorch forward) for a sanity check.
def _fnn_reference(conts, cates, params, cont_field, cate_field):
    B = conts.shape[0]
    table = params["emb"]
    cont_emb = table[:cont_field][None, :, :] * conts[:, :, None]
    cate_emb = jnp.take(table, cates, axis=0)
    x = jnp.concatenate([cont_emb.reshape(B, -1), cate_emb.reshape(B, -1)], axis=1)

    def ln(h, g, b, eps=1e-5):
        mu = h.mean(-1, keepdims=True)
        var = ((h - mu) ** 2).mean(-1, keepdims=True)
        return (h - mu) * jax.lax.rsqrt(var + eps) * g + b

    h = x @ params["w1"].T + params["b1"][:, 0]
    h = jax.nn.relu(ln(h, params["g1"][:, 0], params["be1"][:, 0]))
    h = h @ params["w2"].T + params["b2"][:, 0]
    h = jax.nn.relu(ln(h, params["g2"][:, 0], params["be2"][:, 0]))
    logit = h @ params["wo"].reshape(-1, 1) + params["bo"][0, 0]
    return jax.nn.sigmoid(logit)


if __name__ == "__main__":
    # Small shapes consistent with the module's forward().
    CONT_FIELD = 3
    CATE_FIELD = 5
    VOCAB = 20            # cate_cont_feature
    EMB_DIM = 16          # orig_embedding_dim (40 in reference; shrunk for the demo)
    HIDDEN = [32, 32]     # hidden_dims
    B = 4

    key = jax.random.PRNGKey(0)
    kp, kc, kk = jax.random.split(key, 3)

    params = make_params(kp, CONT_FIELD, CATE_FIELD, VOCAB, EMB_DIM, HIDDEN)

    conts = jax.random.normal(kc, (B, CONT_FIELD), dtype=jnp.float32)
    cates = jax.random.randint(kk, (B, CATE_FIELD), 0, VOCAB, dtype=jnp.int32)
    F = CONT_FIELD + CATE_FIELD
    combs = jnp.zeros((B, F * (F - 1) // 2), dtype=jnp.float32)  # unused, signature parity

    out = fnn_forward(conts, cates, combs, params, CONT_FIELD, CATE_FIELD)
    out = jax.block_until_ready(out)

    assert out.shape == (B, 1)
    assert bool(jnp.all(jnp.isfinite(out)))
    assert bool(jnp.all((out >= 0.0) & (out <= 1.0)))

    ref = _fnn_reference(conts, cates, params, CONT_FIELD, CATE_FIELD)
    max_err = float(jnp.max(jnp.abs(out - ref)))
    assert max_err < 5e-2, f"max abs error vs f32 reference: {max_err}"

    print("KERNEL_OK")
</pallas_src>

<mosaic_0001>
module attributes {stable_mosaic.version = 11 : i64} {
  func.func @_fnn_kernel(%arg0: i32, %arg1: memref<3x128xf32, #tpu.memory_space<vmem>>, %arg2: memref<5x128xi32, #tpu.memory_space<vmem>>, %arg3: memref<16x20xf32, #tpu.memory_space<vmem>>, %arg4: memref<32x128xbf16, #tpu.memory_space<vmem>>, %arg5: memref<32x1xf32, #tpu.memory_space<vmem>>, %arg6: memref<32x1xf32, #tpu.memory_space<vmem>>, %arg7: memref<32x1xf32, #tpu.memory_space<vmem>>, %arg8: memref<32x32xbf16, #tpu.memory_space<vmem>>, %arg9: memref<32x1xf32, #tpu.memory_space<vmem>>, %arg10: memref<32x1xf32, #tpu.memory_space<vmem>>, %arg11: memref<32x1xf32, #tpu.memory_space<vmem>>, %arg12: memref<32x1xf32, #tpu.memory_space<vmem>>, %arg13: memref<1x1xf32, #tpu.memory_space<vmem>>, %arg14: memref<1x128xf32, #tpu.memory_space<vmem>>, %arg15: memref<128x128xf32, #tpu.memory_space<vmem>>) attributes {dimension_semantics = [#tpu.dimension_semantics<parallel>], iteration_bounds = array<i64: 1>, scalar_prefetch = 0 : i64, scratch_operands = 1 : i64, tpu.core_type = #tpu.core_type<tc>, window_params = [{transform_indices = @transform_0, window_bounds = array<i64: 3, 128>}, {transform_indices = @transform_1, window_bounds = array<i64: 5, 128>}, {pipeline_mode = #tpu.pipeline_mode<synchronous>, transform_indices = @transform_2, window_bounds = array<i64: 16, 20>}, {pipeline_mode = #tpu.pipeline_mode<synchronous>, transform_indices = @transform_3, window_bounds = array<i64: 32, 128>}, {pipeline_mode = #tpu.pipeline_mode<synchronous>, transform_indices = @transform_4, window_bounds = array<i64: 32, 1>}, {pipeline_mode = #tpu.pipeline_mode<synchronous>, transform_indices = @transform_5, window_bounds = array<i64: 32, 1>}, {pipeline_mode = #tpu.pipeline_mode<synchronous>, transform_indices = @transform_6, window_bounds = array<i64: 32, 1>}, {pipeline_mode = #tpu.pipeline_mode<synchronous>, transform_indices = @transform_7, window_bounds = array<i64: 32, 32>}, {pipeline_mode = #tpu.pipeline_mode<synchronous>, transform_indices = @transform_8, window_bounds = array<i64: 32, 1>}, {pipeline_mode = #tpu.pipeline_mode<synchronous>, transform_indices = @transform_9, window_bounds = array<i64: 32, 1>}, {pipeline_mode = #tpu.pipeline_mode<synchronous>, transform_indices = @transform_10, window_bounds = array<i64: 32, 1>}, {pipeline_mode = #tpu.pipeline_mode<synchronous>, transform_indices = @transform_11, window_bounds = array<i64: 32, 1>}, {pipeline_mode = #tpu.pipeline_mode<synchronous>, transform_indices = @transform_12, window_bounds = array<i64: 1, 1>}, {transform_indices = @transform_13, window_bounds = array<i64: 1, 128>}]} {
    %c0 = arith.constant 0 : index
    %c0_0 = arith.constant 0 : index
    %0 = vector.load %arg1[%c0, %c0_0] : memref<3x128xf32, #tpu.memory_space<vmem>>, vector<3x128xf32>
    %c0_1 = arith.constant 0 : index
    %c0_2 = arith.constant 0 : index
    %1 = vector.load %arg2[%c0_1, %c0_2] : memref<5x128xi32, #tpu.memory_space<vmem>>, vector<5x128xi32>
    %c0_3 = arith.constant 0 : index
    %c0_4 = arith.constant 0 : index
    %2 = vector.load %arg3[%c0_3, %c0_4] : memref<16x20xf32, #tpu.memory_space<vmem>>, vector<16x20xf32>
    %3 = tpu.iota {dimensions = array<i32: 0>} : vector<20x128xi32>
    %4 = vector.extract_strided_slice %2 {offsets = [0, 0], sizes = [16, 1], strides = [1, 1]} : vector<16x20xf32> to vector<16x1xf32>
    %5 = vector.extract_strided_slice %0 {offsets = [0, 0], sizes = [1, 128], strides = [1, 1]} : vector<3x128xf32> to vector<1x128xf32>
    %6 = vector.broadcast %4 : vector<16x1xf32> to vector<16x128xf32>
    %7 = vector.broadcast %5 : vector<1x128xf32> to vector<16x128xf32>
    %8 = arith.mulf %6, %7 : vector<16x128xf32>
    %c0_5 = arith.constant 0 : index
    %c0_6 = arith.constant 0 : index
    %9 = vector.load %arg15[%c0_5, %c0_6] : memref<128x128xf32, #tpu.memory_space<vmem>>, vector<16x128xf32>
    tpu.vector_store %arg15[%c0_5, %c0_6], %8 {strides = array<i32>} : memref<128x128xf32, #tpu.memory_space<vmem>>, vector<16x128xf32>,
    %10 = vector.extract_strided_slice %2 {offsets = [0, 1], sizes = [16, 1], strides = [1, 1]} : vector<16x20xf32> to vector<16x1xf32>
    %11 = vector.extract_strided_slice %0 {offsets = [1, 0], sizes = [1, 128], strides = [1, 1]} : vector<3x128xf32> to vector<1x128xf32>
    %12 = vector.broadcast %10 : vector<16x1xf32> to vector<16x128xf32>
    %13 = vector.broadcast %11 : vector<1x128xf32> to vector<16x128xf32>
    %14 = arith.mulf %12, %13 : vector<16x128xf32>
    %c16 = arith.constant 16 : index
    %c0_7 = arith.constant 0 : index
    %15 = vector.load %arg15[%c16, %c0_7] : memref<128x128xf32, #tpu.memory_space<vmem>>, vector<16x128xf32>
    tpu.vector_store %arg15[%c16, %c0_7], %14 {strides = array<i32>} : memref<128x128xf32, #tpu.memory_space<vmem>>, vector<16x128xf32>,
    %16 = vector.extract_strided_slice %2 {offsets = [0, 2], sizes = [16, 1], strides = [1, 1]} : vector<16x20xf32> to vector<16x1xf32>
    %17 = vector.extract_strided_slice %0 {offsets = [2, 0], sizes = [1, 128], strides = [1, 1]} : vector<3x128xf32> to vector<1x128xf32>
    %18 = vector.broadcast %16 : vector<16x1xf32> to vector<16x128xf32>
    %19 = vector.broadcast %17 : vector<1x128xf32> to vector<16x128xf32>
    %20 = arith.mulf %18, %19 : vector<16x128xf32>
    %c32 = arith.constant 32 : index
    %c0_8 = arith.constant 0 : index
    %21 = vector.load %arg15[%c32, %c0_8] : memref<128x128xf32, #tpu.memory_space<vmem>>, vector<16x128xf32>
    tpu.vector_store %arg15[%c32, %c0_8], %20 {strides = array<i32>} : memref<128x128xf32, #tpu.memory_space<vmem>>, vector<16x128xf32>,
    %22 = vector.extract_strided_slice %1 {offsets = [0, 0], sizes = [1, 128], strides = [1, 1]} : vector<5x128xi32> to vector<1x128xi32>
    %23 = vector.broadcast %22 : vector<1x128xi32> to vector<20x128xi32>
    %24 = arith.cmpi eq, %3, %23 : vector<20x128xi32>
    %25 = arith.extui %24 : vector<20x128xi1> to vector<20x128xi32>
    %26 = arith.sitofp %25 : vector<20x128xi32> to vector<20x128xf32>
    %cst = arith.constant dense<0.000000e+00> : vector<16x128xf32>
    %27 = tpu.matmul %2, %26, %cst {dimension_numbers = #tpu.dot_dimension_numbers<[1], [0], [0], [1], [0, 0, 1, 1], [], []>} : vector<16x20xf32>, vector<20x128xf32>, vector<16x128xf32> -> vector<16x128xf32>
    %c48 = arith.constant 48 : index
    %c0_9 = arith.constant 0 : index
    %28 = vector.load %arg15[%c48, %c0_9] : memref<128x128xf32, #tpu.memory_space<vmem>>, vector<16x128xf32>
    tpu.vector_store %arg15[%c48, %c0_9], %27 {strides = array<i32>} : memref<128x128xf32, #tpu.memory_space<vmem>>, vector<16x128xf32>,
    %29 = vector.extract_strided_slice %1 {offsets = [1, 0], sizes = [1, 128], strides = [1, 1]} : vector<5x128xi32> to vector<1x128xi32>
    %30 = vector.broadcast %29 : vector<1x128xi32> to vector<20x128xi32>
    %31 = arith.cmpi eq, %3, %30 : vector<20x128xi32>
    %32 = arith.extui %31 : vector<20x128xi1> to vector<20x128xi32>
    %33 = arith.sitofp %32 : vector<20x128xi32> to vector<20x128xf32>
    %cst_10 = arith.constant dense<0.000000e+00> : vector<16x128xf32>
    %34 = tpu.matmul %2, %33, %cst_10 {dimension_numbers = #tpu.dot_dimension_numbers<[1], [0], [0], [1], [0, 0, 1, 1], [], []>} : vector<16x20xf32>, vector<20x128xf32>, vector<16x128xf32> -> vector<16x128xf32>
    %c64 = arith.constant 64 : index
    %c0_11 = arith.constant 0 : index
    %35 = vector.load %arg15[%c64, %c0_11] : memref<128x128xf32, #tpu.memory_space<vmem>>, vector<16x128xf32>
    tpu.vector_store %arg15[%c64, %c0_11], %34 {strides = array<i32>} : memref<128x128xf32, #tpu.memory_space<vmem>>, vector<16x128xf32>,
    %36 = vector.extract_strided_slice %1 {offsets = [2, 0], sizes = [1, 128], strides = [1, 1]} : vector<5x128xi32> to vector<1x128xi32>
    %37 = vector.broadcast %36 : vector<1x128xi32> to vector<20x128xi32>
    %38 = arith.cmpi eq, %3, %37 : vector<20x128xi32>
    %39 = arith.extui %38 : vector<20x128xi1> to vector<20x128xi32>
    %40 = arith.sitofp %39 : vector<20x128xi32> to vector<20x128xf32>
    %cst_12 = arith.constant dense<0.000000e+00> : vector<16x128xf32>
    %41 = tpu.matmul %2, %40, %cst_12 {dimension_numbers = #tpu.dot_dimension_numbers<[1], [0], [0], [1], [0, 0, 1, 1], [], []>} : vector<16x20xf32>, vector<20x128xf32>, vector<16x128xf32> -> vector<16x128xf32>
    %c80 = arith.constant 80 : index
    %c0_13 = arith.constant 0 : index
    %42 = vector.load %arg15[%c80, %c0_13] : memref<128x128xf32, #tpu.memory_space<vmem>>, vector<16x128xf32>
    tpu.vector_store %arg15[%c80, %c0_13], %41 {strides = array<i32>} : memref<128x128xf32, #tpu.memory_space<vmem>>, vector<16x128xf32>,
    %43 = vector.extract_strided_slice %1 {offsets = [3, 0], sizes = [1, 128], strides = [1, 1]} : vector<5x128xi32> to vector<1x128xi32>
    %44 = vector.broadcast %43 : vector<1x128xi32> to vector<20x128xi32>
    %45 = arith.cmpi eq, %3, %44 : vector<20x128xi32>
    %46 = arith.extui %45 : vector<20x128xi1> to vector<20x128xi32>
    %47 = arith.sitofp %46 : vector<20x128xi32> to vector<20x128xf32>
    %cst_14 = arith.constant dense<0.000000e+00> : vector<16x128xf32>
    %48 = tpu.matmul %2, %47, %cst_14 {dimension_numbers = #tpu.dot_dimension_numbers<[1], [0], [0], [1], [0, 0, 1, 1], [], []>} : vector<16x20xf32>, vector<20x128xf32>, vector<16x128xf32> -> vector<16x128xf32>
    %c96 = arith.constant 96 : index
    %c0_15 = arith.constant 0 : index
    %49 = vector.load %arg15[%c96, %c0_15] : memref<128x128xf32, #tpu.memory_space<vmem>>, vector<16x128xf32>
    tpu.vector_store %arg15[%c96, %c0_15], %48 {strides = array<i32>} : memref<128x128xf32, #tpu.memory_space<vmem>>, vector<16x128xf32>,
    %50 = vector.extract_strided_slice %1 {offsets = [4, 0], sizes = [1, 128], strides = [1, 1]} : vector<5x128xi32> to vector<1x128xi32>
    %51 = vector.broadcast %50 : vector<1x128xi32> to vector<20x128xi32>
    %52 = arith.cmpi eq, %3, %51 : vector<20x128xi32>
    %53 = arith.extui %52 : vector<20x128xi1> to vector<20x128xi32>
    %54 = arith.sitofp %53 : vector<20x128xi32> to vector<20x128xf32>
    %cst_16 = arith.constant dense<0.000000e+00> : vector<16x128xf32>
    %55 = tpu.matmul %2, %54, %cst_16 {dimension_numbers = #tpu.dot_dimension_numbers<[1], [0], [0], [1], [0, 0, 1, 1], [], []>} : vector<16x20xf32>, vector<20x128xf32>, vector<16x128xf32> -> vector<16x128xf32>
    %c112 = arith.constant 112 : index
    %c0_17 = arith.constant 0 : index
    %56 = vector.load %arg15[%c112, %c0_17] : memref<128x128xf32, #tpu.memory_space<vmem>>, vector<16x128xf32>
    tpu.vector_store %arg15[%c112, %c0_17], %55 {strides = array<i32>} : memref<128x128xf32, #tpu.memory_space<vmem>>, vector<16x128xf32>,
    %c0_18 = arith.constant 0 : index
    %c0_19 = arith.constant 0 : index
    %57 = vector.load %arg15[%c0_18, %c0_19] : memref<128x128xf32, #tpu.memory_space<vmem>>, vector<128x128xf32>
    %58 = arith.truncf %57 : vector<128x128xf32> to vector<128x128xbf16>
    %c0_20 = arith.constant 0 : index
    %c0_21 = arith.constant 0 : index
    %59 = vector.load %arg4[%c0_20, %c0_21] : memref<32x128xbf16, #tpu.memory_space<vmem>>, vector<32x128xbf16>
    %cst_22 = arith.constant dense<0.000000e+00> : vector<32x128xf32>
    %60 = tpu.matmul %59, %58, %cst_22 {dimension_numbers = #tpu.dot_dimension_numbers<[1], [0], [0], [1], [0, 0, 1, 1], [], []>} : vector<32x128xbf16>, vector<128x128xbf16>, vector<32x128xf32> -> vector<32x128xf32>
    %c0_23 = arith.constant 0 : index
    %c0_24 = arith.constant 0 : index
    %61 = vector.load %arg5[%c0_23, %c0_24] : memref<32x1xf32, #tpu.memory_space<vmem>>, vector<32x1xf32>
    %62 = vector.broadcast %61 : vector<32x1xf32> to vector<32x128xf32>
    %63 = arith.addf %60, %62 : vector<32x128xf32>
    %c0_25 = arith.constant 0 : index
    %c0_26 = arith.constant 0 : index
    %64 = vector.load %arg6[%c0_25, %c0_26] : memref<32x1xf32, #tpu.memory_space<vmem>>, vector<32x1xf32>
    %c0_27 = arith.constant 0 : index
    %c0_28 = arith.constant 0 : index
    %65 = vector.load %arg7[%c0_27, %c0_28] : memref<32x1xf32, #tpu.memory_space<vmem>>, vector<32x1xf32>
    %cst_29 = arith.constant dense<0.000000e+00> : vector<128xf32>
    %66 = vector.multi_reduction <add>, %63, %cst_29 [0] : vector<32x128xf32> to vector<128xf32>
    %67 = vector.shape_cast %66 : vector<128xf32> to vector<1x128xf32>
    %cst_30 = arith.constant 3.200000e+01 : f32
    %68 = vector.broadcast %cst_30 : f32 to vector<1x128xf32>
    %69 = arith.divf %67, %68 : vector<1x128xf32>
    %70 = vector.broadcast %69 : vector<1x128xf32> to vector<32x128xf32>
    %71 = arith.subf %63, %70 : vector<32x128xf32>
    %72 = arith.mulf %71, %71 : vector<32x128xf32>
    %cst_31 = arith.constant dense<0.000000e+00> : vector<128xf32>
    %73 = vector.multi_reduction <add>, %72, %cst_31 [0] : vector<32x128xf32> to vector<128xf32>
    %74 = vector.shape_cast %73 : vector<128xf32> to vector<1x128xf32>
    %cst_32 = arith.constant 3.200000e+01 : f32
    %75 = vector.broadcast %cst_32 : f32 to vector<1x128xf32>
    %76 = arith.divf %74, %75 : vector<1x128xf32>
    %cst_33 = arith.constant 9.99999974E-6 : f32
    %77 = vector.broadcast %cst_33 : f32 to vector<1x128xf32>
    %78 = arith.addf %76, %77 : vector<1x128xf32>
    %79 = math.rsqrt %78 : vector<1x128xf32>
    %80 = vector.broadcast %79 : vector<1x128xf32> to vector<32x128xf32>
    %81 = arith.mulf %71, %80 : vector<32x128xf32>
    %82 = vector.broadcast %64 : vector<32x1xf32> to vector<32x128xf32>
    %83 = arith.mulf %81, %82 : vector<32x128xf32>
    %84 = vector.broadcast %65 : vector<32x1xf32> to vector<32x128xf32>
    %85 = arith.addf %83, %84 : vector<32x128xf32>
    %cst_34 = arith.constant 0.000000e+00 : f32
    %86 = vector.broadcast %cst_34 : f32 to vector<32x128xf32>
    %87 = arith.maximumf %85, %86 : vector<32x128xf32>
    %c0_35 = arith.constant 0 : index
    %c0_36 = arith.constant 0 : index
    %88 = vector.load %arg8[%c0_35, %c0_36] : memref<32x32xbf16, #tpu.memory_space<vmem>>, vector<32x32xbf16>
    %89 = arith.truncf %87 : vector<32x128xf32> to vector<32x128xbf16>
    %cst_37 = arith.constant dense<0.000000e+00> : vector<32x128xf32>
    %90 = tpu.matmul %88, %89, %cst_37 {dimension_numbers = #tpu.dot_dimension_numbers<[1], [0], [0], [1], [0, 0, 1, 1], [], []>} : vector<32x32xbf16>, vector<32x128xbf16>, vector<32x128xf32> -> vector<32x128xf32>
    %c0_38 = arith.constant 0 : index
    %c0_39 = arith.constant 0 : index
    %91 = vector.load %arg9[%c0_38, %c0_39] : memref<32x1xf32, #tpu.memory_space<vmem>>, vector<32x1xf32>
    %92 = vector.broadcast %91 : vector<32x1xf32> to vector<32x128xf32>
    %93 = arith.addf %90, %92 : vector<32x128xf32>
    %c0_40 = arith.constant 0 : index
    %c0_41 = arith.constant 0 : index
    %94 = vector.load %arg10[%c0_40, %c0_41] : memref<32x1xf32, #tpu.memory_space<vmem>>, vector<32x1xf32>
    %c0_42 = arith.constant 0 : index
    %c0_43 = arith.constant 0 : index
    %95 = vector.load %arg11[%c0_42, %c0_43] : memref<32x1xf32, #tpu.memory_space<vmem>>, vector<32x1xf32>
    %cst_44 = arith.constant dense<0.000000e+00> : vector<128xf32>
    %96 = vector.multi_reduction <add>, %93, %cst_44 [0] : vector<32x128xf32> to vector<128xf32>
    %97 = vector.shape_cast %96 : vector<128xf32> to vector<1x128xf32>
    %cst_45 = arith.constant 3.200000e+01 : f32
    %98 = vector.broadcast %cst_45 : f32 to vector<1x128xf32>
    %99 = arith.divf %97, %98 : vector<1x128xf32>
    %100 = vector.broadcast %99 : vector<1x128xf32> to vector<32x128xf32>
    %101 = arith.subf %93, %100 : vector<32x128xf32>
    %102 = arith.mulf %101, %101 : vector<32x128xf32>
    %cst_46 = arith.constant dense<0.000000e+00> : vector<128xf32>
    %103 = vector.multi_reduction <add>, %102, %cst_46 [0] : vector<32x128xf32> to vector<128xf32>
    %104 = vector.shape_cast %103 : vector<128xf32> to vector<1x128xf32>
    %cst_47 = arith.constant 3.200000e+01 : f32
    %105 = vector.broadcast %cst_47 : f32 to vector<1x128xf32>
    %106 = arith.divf %104, %105 : vector<1x128xf32>
    %cst_48 = arith.constant 9.99999974E-6 : f32
    %107 = vector.broadcast %cst_48 : f32 to vector<1x128xf32>
    %108 = arith.addf %106, %107 : vector<1x128xf32>
    %109 = math.rsqrt %108 : vector<1x128xf32>
    %110 = vector.broadcast %109 : vector<1x128xf32> to vector<32x128xf32>
    %111 = arith.mulf %101, %110 : vector<32x128xf32>
    %112 = vector.broadcast %94 : vector<32x1xf32> to vector<32x128xf32>
    %113 = arith.mulf %111, %112 : vector<32x128xf32>
    %114 = vector.broadcast %95 : vector<32x1xf32> to vector<32x128xf32>
    %115 = arith.addf %113, %114 : vector<32x128xf32>
    %cst_49 = arith.constant 0.000000e+00 : f32
    %116 = vector.broadcast %cst_49 : f32 to vector<32x128xf32>
    %117 = arith.maximumf %115, %116 : vector<32x128xf32>
    %c0_50 = arith.constant 0 : index
    %c0_51 = arith.constant 0 : index
    %118 = vector.load %arg12[%c0_50, %c0_51] : memref<32x1xf32, #tpu.memory_space<vmem>>, vector<32x1xf32>
    %119 = vector.broadcast %118 : vector<32x1xf32> to vector<32x128xf32>
    %120 = arith.mulf %117, %119 : vector<32x128xf32>
    %cst_52 = arith.constant dense<0.000000e+00> : vector<128xf32>
    %121 = vector.multi_reduction <add>, %120, %cst_52 [0] : vector<32x128xf32> to vector<128xf32>
    %122 = vector.shape_cast %121 : vector<128xf32> to vector<1x128xf32>
    %c0_53 = arith.constant 0 : index
    %c0_54 = arith.constant 0 : index
    %123 = vector.load %arg13[%c0_53, %c0_54] : memref<1x1xf32, #tpu.memory_space<vmem>>, vector<1x1xf32>
    %124 = vector.broadcast %123 : vector<1x1xf32> to vector<1x128xf32>
    %125 = arith.addf %122, %124 : vector<1x128xf32>
    %126 = arith.negf %125 : vector<1x128xf32>
    %127 = math.exp %126 : vector<1x128xf32>
    %cst_55 = arith.constant 1.000000e+00 : f32
    %128 = vector.broadcast %cst_55 : f32 to vector<1x128xf32>
    %129 = arith.addf %128, %127 : vector<1x128xf32>
    %130 = arith.divf %128, %129 : vector<1x128xf32>
    %c0_56 = arith.constant 0 : index
    %c0_57 = arith.constant 0 : index
    %131 = vector.load %arg14[%c0_56, %c0_57] : memref<1x128xf32, #tpu.memory_space<vmem>>, vector<1x128xf32>
    tpu.vector_store %arg14[%c0_56, %c0_57], %130 {strides = array<i32>} : memref<1x128xf32, #tpu.memory_space<vmem>>, vector<1x128xf32>,
    return
  }
  func.func @transform_0(%arg0: i32) -> (i32, i32) {
    %c0_i32 = arith.constant 0 : i32
    %c0_i32_0 = arith.constant 0 : i32
    return %c0_i32, %arg0 : i32, i32
  }
  func.func @transform_1(%arg0: i32) -> (i32, i32) {
    %c0_i32 = arith.constant 0 : i32
    %c0_i32_0 = arith.constant 0 : i32
    return %c0_i32, %arg0 : i32, i32
  }
  func.func @transform_2(%arg0: i32) -> (i32, i32) {
    %c0_i32 = arith.constant 0 : i32
    %c0_i32_0 = arith.constant 0 : i32
    %c0_i32_1 = arith.constant 0 : i32
    return %c0_i32, %c0_i32_0 : i32, i32
  }
  func.func @transform_3(%arg0: i32) -> (i32, i32) {
    %c0_i32 = arith.constant 0 : i32
    %c0_i32_0 = arith.constant 0 : i32
    %c0_i32_1 = arith.constant 0 : i32
    return %c0_i32, %c0_i32_0 : i32, i32
  }
  func.func @transform_4(%arg0: i32) -> (i32, i32) {
    %c0_i32 = arith.constant 0 : i32
    %c0_i32_0 = arith.constant 0 : i32
    %c0_i32_1 = arith.constant 0 : i32
    return %c0_i32, %c0_i32_0 : i32, i32
  }
  func.func @transform_5(%arg0: i32) -> (i32, i32) {
    %c0_i32 = arith.constant 0 : i32
    %c0_i32_0 = arith.constant 0 : i32
    %c0_i32_1 = arith.constant 0 : i32
    return %c0_i32, %c0_i32_0 : i32, i32
  }
  func.func @transform_6(%arg0: i32) -> (i32, i32) {
    %c0_i32 = arith.constant 0 : i32
    %c0_i32_0 = arith.constant 0 : i32
    %c0_i32_1 = arith.constant 0 : i32
    return %c0_i32, %c0_i32_0 : i32, i32
  }
  func.func @transform_7(%arg0: i32) -> (i32, i32) {
    %c0_i32 = arith.constant 0 : i32
    %c0_i32_0 = arith.constant 0 : i32
    %c0_i32_1 = arith.constant 0 : i32
    return %c0_i32, %c0_i32_0 : i32, i32
  }
  func.func @transform_8(%arg0: i32) -> (i32, i32) {
    %c0_i32 = arith.constant 0 : i32
    %c0_i32_0 = arith.constant 0 : i32
    %c0_i32_1 = arith.constant 0 : i32
    return %c0_i32, %c0_i32_0 : i32, i32
  }
  func.func @transform_9(%arg0: i32) -> (i32, i32) {
    %c0_i32 = arith.constant 0 : i32
    %c0_i32_0 = arith.constant 0 : i32
    %c0_i32_1 = arith.constant 0 : i32
    return %c0_i32, %c0_i32_0 : i32, i32
  }
  func.func @transform_10(%arg0: i32) -> (i32, i32) {
    %c0_i32 = arith.constant 0 : i32
    %c0_i32_0 = arith.constant 0 : i32
    %c0_i32_1 = arith.constant 0 : i32
    return %c0_i32, %c0_i32_0 : i32, i32
  }
  func.func @transform_11(%arg0: i32) -> (i32, i32) {
    %c0_i32 = arith.constant 0 : i32
    %c0_i32_0 = arith.constant 0 : i32
    %c0_i32_1 = arith.constant 0 : i32
    return %c0_i32, %c0_i32_0 : i32, i32
  }
  func.func @transform_12(%arg0: i32) -> (i32, i32) {
    %c0_i32 = arith.constant 0 : i32
    %c0_i32_0 = arith.constant 0 : i32
    %c0_i32_1 = arith.constant 0 : i32
    return %c0_i32, %c0_i32_0 : i32, i32
  }
  func.func @transform_13(%arg0: i32) -> (i32, i32) {
    %c0_i32 = arith.constant 0 : i32
    %c0_i32_0 = arith.constant 0 : i32
    return %c0_i32, %arg0 : i32, i32
  }
}

</mosaic_0001>

<bundles_post_ra>
// kernel: tpu_custom_call.1
= control target key start
LH: loop header
LB: loop body
LE: loop exit
PB: predicated region body
PF: predicated region fallthrough
CT: control target
= control target key end

     0   :  { %s1080_s0 = inlined_call_operand.vmem [shape: f32[3,128], index: 0, kind: input, shape index: {}]   ;;  %s1081_s1 = inlined_call_operand.vmem [shape: s32[5,128], index: 1, kind: input, shape index: {}]   ;;  %s1082_s2 = inlined_call_operand.vmem [shape: f32[16,20], index: 2, kind: input, shape index: {}]   ;;  %s1083_s3 = inlined_call_operand.vmem [shape: bf16[32,128], index: 3, kind: input, shape index: {}]   ;;  %s1084_s4 = inlined_call_operand.vmem [shape: f32[32,1], index: 4, kind: input, shape index: {}]   ;;  %s1085_s5 = inlined_call_operand.vmem [shape: f32[32,1], index: 5, kind: input, shape index: {}]   ;;  %s1086_s6 = inlined_call_operand.vmem [shape: f32[32,1], index: 6, kind: input, shape index: {}]   ;;  %s1087_s7 = inlined_call_operand.vmem [shape: bf16[32,32], index: 7, kind: input, shape index: {}]   ;;  %s1088_s8 = inlined_call_operand.vmem [shape: f32[32,1], index: 8, kind: input, shape index: {}]   ;;  %s1089_s9 = inlined_call_operand.vmem [shape: f32[32,1], index: 9, kind: input, shape index: {}]   ;;  %s1090_s10 = inlined_call_operand.vmem [shape: f32[32,1], index: 10, kind: input, shape index: {}]   ;;  %s1091_s11 = inlined_call_operand.vmem [shape: f32[32,1], index: 11, kind: input, shape index: {}]   ;;  %s1092_s12 = inlined_call_operand.<no memory space> [shape: f32[1,1], index: 12, kind: input, shape index: {}]   ;;  %s1093_s13 = inlined_call_operand.hbm [shape: f32[1,128], index: 13, kind: output, shape index: {}]  }
   0x1   :  { %v18_v0 = vstv %s1092_s12 }
   0x2   :  { %19 = vst [vmem:[#allocation3] sm:$0x1] %v18_v0 }
   0x3   :  { %v938_v1 = vld [vmem:[%s1082_s2] sm:$0xff]  ;;  %v52_v3 = vlaneseq  ;;  %v855_v4 = vmov 0  }
   0x4   :  { %v49_v2 = vld [vmem:[%s1081_s1] sm:$0x1f]  ;;  %816 = vset.pattern.permute.xlu2 %v855_v4 }
   0x5   :  { %58 = vperm.xlu2 %816, %v938_v1   ;;  %v53_v5 = vshrl.u32 %v52_v3, 7  ;;  %v97_v6 = vperm.slane %v49_v2, 0  ;;  %v217_v7 = vperm.slane %v49_v2, 3  ;;  %v179_v8 = vperm.slane %v49_v2, 2 }
   0x6   :  { %20 = vsyncpa [#allocation5], 0  ;;  %v141_v11 = vperm.slane %v49_v2, 1  ;;  %vm112_vm0 = vcmask 1043456   ;;  %v255_v12 = vperm.slane %v49_v2, 4  ;;  %v856_v13 = vmov 0.0  }
   0x7   :  { %v55_v9 = vadd.s32 16, %v53_v5  ;;  %v54_v10 = vadd.s32 8, %v53_v5  ;;  %v51_v15 = vld [vmem:[%s1082_s2 + $0x8] sm:$0xff]  ;;  %vm98_vm8 = vcmp.eq.s32.totalorder %v53_v5, %v97_v6  ;;  %v857_v19 = vmov 1.0   ;;  %v323_v21 = vld [vmem:[%s1084_s4 + $0x10] sm:$0xff]  ;;  %v383_v25 = vld [vmem:[%s1086_s6 + $0x18] sm:$0xff] }
   0x8   :  { %vm107_vm10 = vcmask 162816   ;;  %vm218_vm11 = vcmp.eq.s32.totalorder %v53_v5, %v217_v7  ;;  %vm180_vm12 = vcmp.eq.s32.totalorder %v53_v5, %v179_v8  ;;  %vm142_vm15 = vcmp.eq.s32.totalorder %v53_v5, %v141_v11  ;;  %v378_v24 = vld [vmem:[%s1085_s5 + $0x10] sm:$0xff]  ;;  %v380_v26 = vld [vmem:[%s1086_s6] sm:$0xff]  ;;  %v493_v27 = vld [vmem:[%s1088_s8 + $0x8] sm:$0xff]  ;;  %s727_s1 = sshll.u32 %s1093_s13, 4  ;;  %s728_s1 = int_to_ptr.hbm [resolvable:$true] %s727_s1 }
   0x9   :  { %vm100_vm1 = vcmp.eq.s32.totalorder %v55_v9, %v97_v6  ;;  %vm220_vm2 = vcmp.eq.s32.totalorder %v55_v9, %v217_v7  ;;  %vm99_vm3 = vcmp.eq.s32.totalorder %v54_v10, %v97_v6  ;;  %vm182_vm4 = vcmp.eq.s32.totalorder %v55_v9, %v179_v8  ;;  %v552_v28 = vld [vmem:[%s1089_s9] sm:$0xff]  ;;  %v558_v30 = vld [vmem:[%s1090_s10 + $0x10] sm:$0xff]  ;;  %v656_v31 = vld [vmem:[%s1091_s11 + $0x8] sm:$0xff] }
   0xa   :  { %v738_v14 = vsel %vm100_vm1, 1.0, %v856_v13  ;;  %v762_v16 = vsel %vm220_vm2, 1.0, %v856_v13  ;;  %vm219_vm5 = vcmp.eq.s32.totalorder %v54_v10, %v217_v7  ;;  %v754_v17 = vsel %vm182_vm4, 1.0, %v856_v13  ;;  %v556_v29 = vld [vmem:[%s1090_s10] sm:$0xff]  ;;  %v322_v33 = vld [vmem:[%s1084_s4 + $0x8] sm:$0xff]  ;;  %v324_v34 = vld [vmem:[%s1084_s4 + $0x18] sm:$0xff] }
   0xb   :  { %739 = vmatpush.msk.msra.mxu0 %vm112_vm0, %v738_v14  ;;  %763 = vmatpush.msk.msra.mxu3 %vm112_vm0, %v762_v16  ;;  %vm181_vm6 = vcmp.eq.s32.totalorder %v54_v10, %v179_v8  ;;  %vm144_vm7 = vcmp.eq.s32.totalorder %v55_v9, %v141_v11  ;;  %vm258_vm9 = vcmp.eq.s32.totalorder %v55_v9, %v255_v12  ;;  %v858_v22 = vmov 2   ;;  %v692_v32 = vld [vmem:[#allocation3] sm:$0x1]  ;;  %v382_v36 = vld [vmem:[%s1086_s6 + $0x10] sm:$0xff]  ;;  %v379_v37 = vld [vmem:[%s1085_s5 + $0x18] sm:$0xff] }
   0xc   :  { %755 = vmatpush.msk.msra.mxu2 %vm112_vm0, %v754_v17  ;;  %v746_v18 = vsel %vm144_vm7, 1.0, %v856_v13  ;;  %v770_v20 = vsel %vm258_vm9, 1.0, %v856_v13  ;;  %vm143_vm13 = vcmp.eq.s32.totalorder %v54_v10, %v141_v11  ;;  %vm257_vm14 = vcmp.eq.s32.totalorder %v54_v10, %v255_v12  ;;  %814 = vset.pattern.permute.xlu0 %v858_v22  ;;  %v321_v35 = vld [vmem:[%s1084_s4] sm:$0xff]  ;;  %v377_v38 = vld [vmem:[%s1085_s5 + $0x8] sm:$0xff]  ;;  %v495_v44 = vld [vmem:[%s1088_s8 + $0x18] sm:$0xff] }
   0xd   :  { %63 = vperm.xlu2 %816, %v51_v15   ;;  %740 = vmatpush.msk.msra.mxu0 %vm99_vm3, %v857_v19  ;;  %vm256_vm1 = vcmp.eq.s32.totalorder %v53_v5, %v255_v12  ;;  %v859_v23 = vmov 1   ;;  %v376_v39 = vld [vmem:[%s1085_s5] sm:$0xff]  ;;  %v381_v42 = vld [vmem:[%s1086_s6 + $0x8] sm:$0xff]  ;;  %v494_v45 = vld [vmem:[%s1088_s8 + $0x10] sm:$0xff] }
   0xe   :  { %764 = vmatpush.msk.msra.mxu3 %vm219_vm5, %v857_v19  ;;  %756 = vmatpush.msk.msra.mxu2 %vm181_vm6, %v857_v19  ;;  %v492_v41 = vld [vmem:[%s1088_s8] sm:$0xff]  ;;  %v554_v48 = vld [vmem:[%s1089_s9 + $0x10] sm:$0xff]  ;;  %v553_v49 = vld [vmem:[%s1089_s9 + $0x8] sm:$0xff]  ;;  %vm526_vm5 = vcmask 261120  }
   0xf   :  { %741 = vmatpush.msk.msra.mxu0 %vm98_vm8, %v857_v19  ;;  %747 = vmatpush.msk.msra.mxu1 %vm112_vm0, %v746_v18  ;;  %v555_v55 = vld [vmem:[%s1089_s9 + $0x18] sm:$0xff]  ;;  %v557_v56 = vld [vmem:[%s1090_s10 + $0x8] sm:$0xff]  ;;  %v655_v62 = vld [vmem:[%s1091_s11] sm:$0xff] }
  0x10   :  { %742 = vmatmul.msk.f32.vlgmr.msra.gmra.mxu0 %vm107_vm10, %v938_v1  ;;  %765 = vmatpush.msk.msra.mxu3 %vm218_vm11, %v857_v19  ;;  %v559_v63 = vld [vmem:[%s1090_s10 + $0x18] sm:$0xff]  ;;  %v48_v0 = vld [vmem:[%s1080_s0] sm:$0x7]  ;;  %v657_v11 = vld [vmem:[%s1091_s11 + $0x10] sm:$0xff] }
  0x11   :  { %766 = vmatmul.msk.f32.vlgmr.msra.gmra.mxu3 %vm107_vm10, %v938_v1  ;;  %757 = vmatpush.msk.msra.mxu2 %vm180_vm12, %v857_v19  ;;  %v92_v2 = vperm.slane %v48_v0, 2  ;;  %v79_v8 = vperm.slane %v48_v0, 1  ;;  %v658_v10 = vld [vmem:[%s1091_s11 + $0x18] sm:$0xff]  ;;  %v66_v13 = vperm.slane %v48_v0, 0  ;;  %v795_v22 = vld [vmem:[%s1083_s3] sm:$0xff] }
  0x12   :  { %771 = vmatpush.msk.msrb.mxu0 %vm112_vm0, %v770_v20  ;;  %758 = vmatmul.msk.f32.vlgmr.msra.gmra.mxu2 %vm107_vm10, %v938_v1 }
  0x13   :  { %748 = vmatpush.msk.msra.mxu1 %vm143_vm13, %v857_v19  ;;  %85 = vperm.xlu0 %814, %v938_v1  }
  0x14   :  { %772 = vmatpush.msk.msrb.mxu0 %vm257_vm14, %v857_v19  ;;  %815 = vset.pattern.permute.xlu1 %v859_v23  ;;  %v796_v23 = vld [vmem:[%s1083_s3 + $0x8] sm:$0xff] }
  0x15   :  { %337 = vperm.xlu2 %816, %v323_v21   ;;  %749 = vmatpush.msk.msra.mxu1 %vm142_vm15, %v857_v19 }
  0x16   :  { %773 = vmatpush.msk.msrb.mxu0 %vm256_vm1, %v857_v19  ;;  %750 = vmatmul.msk.f32.vlgmr.msra.gmra.mxu1 %vm107_vm10, %v938_v1 }
  0x17   :  { %72 = vperm.xlu1 %815, %v938_v1  }
  0x18   :  { %743 = vmatmul.msk.f32.gmra.mxu0 %vm107_vm10, %v51_v15 }
  0x19   :  { %767 = vmatmul.msk.f32.gmra.mxu3 %vm107_vm10, %v51_v15 }
  0x1a   :  { %759 = vmatmul.msk.f32.gmra.mxu2 %vm107_vm10, %v51_v15 }
  0x1b   :  { %89 = vperm.xlu0 %814, %v51_v15  }
  0x1d   :  { %446 = vperm.xlu2 %816, %v378_v24  }
  0x1e   :  { %751 = vmatmul.msk.f32.gmra.mxu1 %vm107_vm10, %v51_v15 }
  0x1f   :  { %76 = vperm.xlu1 %815, %v51_v15  }
  0x20   :  { %774 = vmatmul.msk.f32.vlgmr.msrb.gmra.mxu0 %vm107_vm10, %v938_v1 }
  0x23   :  { %817 = vset.pattern.permute.xlu0 %v855_v4 }
  0x24   :  { %327 = vperm.xlu0 %817, %v321_v35  }
  0x25   :  { %475 = vperm.xlu2 %816, %v383_v25   ;;  %v860_v25 = vmov 32.0  }
  0x26   :  { %819 = vrcp.f32 %v860_v25 }
  0x27   :  { %818 = vset.pattern.permute.xlu1 %v855_v4 }
  0x28   :  { %775 = vmatmul.msk.f32.gmra.mxu0 %vm107_vm10, %v51_v15  ;;  %332 = vperm.xlu1 %818, %v322_v33  }
  0x2c   :  { %451 = vperm.xlu0 %817, %v379_v37  }
  0x2d   :  { %460 = vperm.xlu2 %816, %v380_v26  }
  0x30   :  { %342 = vperm.xlu1 %818, %v324_v34  }
  0x34   :  { %436 = vperm.xlu0 %817, %v376_v39  }
  0x35   :  { %503 = vperm.xlu2 %816, %v493_v27  }
  0x38   :  { %470 = vperm.xlu1 %818, %v382_v36  }
  0x3c   :  { %465 = vperm.xlu0 %817, %v381_v42  }
  0x3d   :  { %605 = vperm.xlu2 %816, %v552_v28  }
  0x40   :  { %441 = vperm.xlu1 %818, %v377_v38  }
  0x44   :  { %508 = vperm.xlu0 %817, %v494_v45  }
  0x45   :  { %629 = vperm.xlu2 %816, %v556_v29  }
  0x48   :  { %498 = vperm.xlu1 %818, %v492_v41  }
  0x4c   :  { %610 = vperm.xlu0 %817, %v553_v49  }
  0x4d   :  { %639 = vperm.xlu2 %816, %v558_v30   ;;  %v820_v30 = vpop.eup %819 }
  0x4e   :  { %v394_v35 = vmul.f32 32.0, %v820_v30  ;;  %vm398_vm0 = vweird.f32 %v820_v30 }
  0x50   :  { %513 = vperm.xlu1 %818, %v495_v44   ;;  %v395_v41 = vsub.f32 1.0, %v394_v35 }
  0x52   :  { %v396_v44 = vmul.f32 %v820_v30, %v395_v41  ;;  %v797_v41 = vld [vmem:[%s1087_s7] sm:$0xff] }
  0x54   :  { %634 = vperm.xlu0 %817, %v557_v56  }
  0x55   :  { %666 = vperm.xlu2 %816, %v656_v31  }
  0x58   :  { %615 = vperm.xlu1 %818, %v554_v48  }
  0x5c   :  { %644 = vperm.xlu0 %817, %v559_v63  }
  0x5d   :  { %695 = vperm.xlu2 %816, %v692_v32  }
  0x5f   :  { %v59_v4 = vpop.permute.xlu2 %58 }
  0x60   :  { %620 = vperm.xlu1 %818, %v555_v55   ;;  %v67_v18 = vmul.f32 %v66_v13, %v59_v4 }
  0x64   :  { %671 = vperm.xlu0 %817, %v657_v11  }
  0x67   :  { %v64_v17 = vpop.permute.xlu2 %63 }
  0x68   :  { %661 = vperm.xlu1 %818, %v655_v62   ;;  %v68_v19 = vmul.f32 %v66_v13, %v64_v17 }
  0x6a   :  { %v309_v21 = vpack.c.bf16 %v68_v19, %v67_v18 }
  0x6f   :  { %v338_v34 = vpop.permute.xlu2 %337 }
  0x70   :  { %676 = vperm.xlu1 %818, %v658_v10  }
  0x85   :  { %v86_v57 = vpop.permute.xlu0 %85 }
  0x86   :  { %v93_v7 = vmul.f32 %v92_v2, %v86_v57 }
  0x89   :  { %v73_v60 = vpop.permute.xlu1 %72 }
  0x8a   :  { %v80_v14 = vmul.f32 %v79_v8, %v73_v60 }
  0x8d   :  { %v133_v40 = vpop.f32.mrf.mxu0  ;;  %v90_v5 = vpop.permute.xlu0 %89 }
  0x8e   :  { %v94_v9 = vmul.f32 %v92_v2, %v90_v5 }
  0x90   :  { %v311_v16 = vpack.c.bf16 %v94_v9, %v93_v7 }
  0x91   :  { %v77_v12 = vpop.permute.xlu1 %76 }
  0x92   :  { %v81_v15 = vmul.f32 %v79_v8, %v77_v12  ;;  %v447_v8 = vpop.permute.xlu2 %446 }
  0x93   :  { %v171_v51 = vpop.f32.mrf.mxu1 }
  0x94   :  { %v247_v46 = vpop.f32.mrf.mxu3  ;;  %v310_v20 = vpack.c.bf16 %v81_v15, %v80_v14 }
  0x95   :  { %v136_v43 = vpop.f32.mrf.mxu0  ;;  %v209_v50 = vpop.f32.mrf.mxu2 }
  0x96   :  { %v312_v6 = vpack.c.bf16 %v136_v43, %v133_v40  ;;  %v328_v28 = vpop.permute.xlu0 %327 }
  0x9a   :  { %v333_v26 = vpop.permute.xlu1 %332  ;;  %v476_v14 = vpop.permute.xlu2 %475 }
  0x9b   :  { %v174_v1 = vpop.f32.mrf.mxu1 }
  0x9c   :  { %v250_v54 = vpop.f32.mrf.mxu3  ;;  %v313_v3 = vpack.c.bf16 %v174_v1, %v171_v51 }
  0x9d   :  { %v285_v47 = vpop.f32.mrf.mxu0  ;;  %v315_v58 = vpack.c.bf16 %v250_v54, %v247_v46  ;;  %v212_v59 = vpop.f32.mrf.mxu2 }
  0x9e   :  { %v314_v61 = vpack.c.bf16 %v212_v59, %v209_v50  ;;  %v452_v9 = vpop.permute.xlu0 %451 }
  0xa2   :  { %v343_v37 = vpop.permute.xlu1 %342 }
  0xa5   :  { %v288_v52 = vpop.f32.mrf.mxu0 }
  0xa6   :  { %v316_v53 = vpack.c.bf16 %v288_v52, %v285_v47  ;;  %v397_v47 = vadd.f32 %v820_v30, %v396_v44  ;;  %v437_v15 = vpop.permute.xlu0 %436 }
  0xa8   :  { %357 = vmatpush.bf16.msrb.mxu1 %v316_v53  ;;  %799 = vmatpush.bf16.msrb.mxu3 %v316_v53  ;;  %v1065_v50 = vsel %vm398_vm0, %v820_v30, %v397_v47 }
  0xaa   :  { %v471_v12 = vpop.permute.xlu1 %470 }
  0xac   :  { %358 = vmatpush.bf16.msrb.mxu1 %v315_v58  ;;  %800 = vmatpush.bf16.msrb.mxu3 %v315_v58 }
  0xae   :  { %v466_v30 = vpop.permute.xlu0 %465 }
  0xb0   :  { %359 = vmatpush.bf16.msrb.mxu1 %v314_v61  ;;  %801 = vmatpush.bf16.msrb.mxu3 %v314_v61 }
  0xb4   :  { %360 = vmatpush.bf16.msrb.mxu1 %v313_v3  ;;  %802 = vmatpush.bf16.msrb.mxu3 %v313_v3 }
  0xb8   :  { %361 = vmatpush.bf16.msrb.mxu1 %v312_v6  ;;  %803 = vmatpush.bf16.msrb.mxu3 %v312_v6 }
  0xbc   :  { %362 = vmatpush.bf16.msrb.mxu1 %v311_v16  ;;  %804 = vmatpush.bf16.msrb.mxu3 %v311_v16 }
  0xc0   :  { %363 = vmatpush.bf16.msrb.mxu1 %v310_v20  ;;  %805 = vmatpush.bf16.msrb.mxu3 %v310_v20 }
  0xc4   :  { %364 = vmatpush.bf16.msrb.mxu1 %v309_v21  ;;  %806 = vmatpush.bf16.msrb.mxu3 %v309_v21 }
  0xc7   :  { %365 = vmatmul.bf16.vlgmr.msrb.gmra.mxu1 %v795_v22  ;;  %370 = vmatmul.bf16.vlgmr.msrb.gmra.mxu3 %v796_v23 }
 0x144   :  { %v366_v24 = vpop.f32.mrf.mxu1 }
 0x145   :  { %v367_v31 = vadd.f32 %v366_v24, %v328_v28  ;;  %v442_v24 = vpop.permute.xlu1 %441 }
 0x14a   :  { %v371_v27 = vpop.f32.mrf.mxu3 }
 0x14b   :  { %v372_v36 = vadd.f32 %v371_v27, %v338_v34 }
 0x14c   :  { %v368_v29 = vpop.f32.mrf.mxu1 }
 0x14d   :  { %v369_v32 = vadd.f32 %v368_v29, %v333_v26  ;;  %v461_v29 = vpop.permute.xlu2 %460 }
 0x14f   :  { %v384_v33 = vadd.f32 %v369_v32, %v367_v31 }
 0x151   :  { %v385_v40 = vadd.f32 %v384_v33, %v372_v36 }
 0x152   :  { %v373_v38 = vpop.f32.mrf.mxu3 }
 0x153   :  { %v374_v39 = vadd.f32 %v373_v38, %v343_v37 }
 0x155   :  { %v386_v42 = vadd.f32 %v385_v40, %v374_v39  ;;  %v504_v47 = vpop.permute.xlu2 %503 }
 0x157   :  { %v387_v43 = vrot.slane %v386_v42, 4 }
 0x159   :  { %v388_v45 = vadd.f32 %v387_v43, %v386_v42  ;;  %v798_v42 = vld [vmem:[%s1087_s7 + $0x8] sm:$0xff]  ;;  %s861_s7 = smov [#allocation4]  }
 0x15a   :  { %s725_s29 = sshll.u32 %s861_s7, 4  ;;  %s726_s29 = int_to_ptr.vmem [resolvable:$true] %s725_s29 }
 0x15b   :  { %v389_v46 = vrot.slane %v388_v45, 2 }
 0x15d   :  { %v390_v48 = vadd.f32 %v389_v46, %v388_v45  ;;  %v499_v45 = vpop.permute.xlu1 %498 }
 0x15f   :  { %v391_v49 = vrot.slane %v390_v48, 1 }
 0x161   :  { %v392_v51 = vadd.f32 %v391_v49, %v390_v48  ;;  %v509_v49 = vpop.permute.xlu0 %508 }
 0x163   :  { %v400_v52 = vmul.f32 %v1065_v50, %v392_v51 }
 0x165   :  { %v401_v53 = vsub.f32 %v367_v31, %v400_v52  ;;  %v402_v54 = vsub.f32 %v369_v32, %v400_v52  ;;  %v403_v55 = vsub.f32 %v372_v36, %v400_v52  ;;  %v404_v56 = vsub.f32 %v374_v39, %v400_v52 }
 0x167   :  { %v405_v57 = vmul.f32 %v401_v53, %v401_v53  ;;  %v406_v58 = vmul.f32 %v402_v54, %v402_v54  ;;  %v407_v59 = vmul.f32 %v403_v55, %v403_v55  ;;  %v408_v61 = vmul.f32 %v404_v56, %v404_v56 }
 0x169   :  { %v409_v60 = vadd.f32 %v406_v58, %v405_v57 }
 0x16b   :  { %v410_v62 = vadd.f32 %v409_v60, %v407_v59 }
 0x16d   :  { %v411_v63 = vadd.f32 %v410_v62, %v408_v61 }
 0x16f   :  { %v412_v0 = vrot.slane %v411_v63, 4 }
 0x171   :  { %v413_v1 = vadd.f32 %v412_v0, %v411_v63 }
 0x173   :  { %v414_v2 = vrot.slane %v413_v1, 2 }
 0x175   :  { %v415_v3 = vadd.f32 %v414_v2, %v413_v1 }
 0x177   :  { %v416_v4 = vrot.slane %v415_v3, 1 }
 0x179   :  { %v417_v5 = vadd.f32 %v416_v4, %v415_v3 }
 0x17b   :  { %v418_v6 = vmul.f32 %v417_v5, %v1065_v50 }
 0x17d   :  { %v419_v7 = vadd.f32 1e-05, %v418_v6 }
 0x17f   :  { %821 = vrsqrt.f32 %v419_v7  ;;  %vm426_vm3 = vweird.f32 %v419_v7 }
 0x185   :  { %v822_v10 = vpop.eup %821 }
 0x186   :  { %v421_v11 = vmul.f32 %v822_v10, %v419_v7  ;;  %vm427_vm2 = vweird.f32 %v822_v10 }
 0x187   :  { %vm428_vm4 = vmor %vm426_vm3, %vm427_vm2 }
 0x188   :  { %v422_v13 = vmul.f32 %v822_v10, %v421_v11 }
 0x18a   :  { %v423_v16 = vmul.f32 0.5, %v422_v13 }
 0x18c   :  { %v424_v17 = vsub.f32 1.5, %v423_v16 }
 0x18e   :  { %v425_v18 = vmul.f32 %v822_v10, %v424_v17 }
 0x190   :  { %v429_v19 = vsel %vm428_vm4, %v822_v10, %v425_v18 }
 0x191   :  { %v433_v20 = vmul.f32 %v429_v19, %v404_v56  ;;  %v432_v21 = vmul.f32 %v429_v19, %v403_v55  ;;  %v430_v22 = vmul.f32 %v429_v19, %v401_v53  ;;  %v431_v23 = vmul.f32 %v429_v19, %v402_v54  ;;  %v514_v54 = vpop.permute.xlu1 %513  ;;  %v606_v19 = vpop.permute.xlu2 %605 }
 0x193   :  { %v456_v25 = vmul.f32 %v447_v8, %v432_v21  ;;  %v457_v26 = vmul.f32 %v452_v9, %v433_v20  ;;  %v454_v27 = vmul.f32 %v437_v15, %v430_v22  ;;  %v455_v28 = vmul.f32 %v442_v24, %v431_v23  ;;  %v611_v21 = vpop.permute.xlu0 %610 }
 0x195   :  { %v480_v31 = vadd.f32 %v471_v12, %v456_v25  ;;  %v481_v32 = vadd.f32 %v476_v14, %v457_v26  ;;  %v478_v33 = vadd.f32 %v461_v29, %v454_v27  ;;  %v479_v34 = vadd.f32 %v466_v30, %v455_v28 }
 0x197   :  { %v484_v35 = vmax.f32 %v480_v31, 0.0  ;;  %v485_v36 = vmax.f32 %v481_v32, 0.0  ;;  %v482_v38 = vmax.f32 %v478_v33, 0.0  ;;  %v483_v39 = vmax.f32 %v479_v34, 0.0 }
 0x199   :  { %v491_v37 = vpack.c.bf16 %v485_v36, %v484_v35  ;;  %v490_v40 = vpack.c.bf16 %v483_v39, %v482_v38  ;;  %v616_v23 = vpop.permute.xlu1 %615  ;;  %v630_v24 = vpop.permute.xlu2 %629 }
 0x19b   :  { %539 = vmatpush.bf16.msrb.mxu2 %v491_v37  ;;  %v635_v26 = vpop.permute.xlu0 %634 }
 0x19f   :  { %540 = vmatpush.bf16.msrb.mxu2 %v490_v40 }
 0x1a1   :  { %v621_v28 = vpop.permute.xlu1 %620  ;;  %v640_v32 = vpop.permute.xlu2 %639 }
 0x1a2   :  { %792 = vmatmul.msk.bf16.vlgmr.msrb.gmra.mxu2 %vm526_vm5, %v797_v41 }
 0x1a3   :  { %v645_v34 = vpop.permute.xlu0 %644 }
 0x1a9   :  { %v662_v39 = vpop.permute.xlu1 %661 }
 0x1b2   :  { %793 = vmatmul.msk.bf16.gmra.mxu2 %vm526_vm5, %v798_v42 }
 0x225   :  { %v542_v43 = vpop.f32.mrf.mxu2 }
 0x226   :  { %v543_v51 = vadd.f32 %v542_v43, %v499_v45 }
 0x22d   :  { %v544_v44 = vpop.f32.mrf.mxu2 }
 0x22e   :  { %v545_v48 = vadd.f32 %v544_v44, %v504_v47 }
 0x230   :  { %v560_v53 = vadd.f32 %v545_v48, %v543_v51 }
 0x235   :  { %v547_v46 = vpop.f32.mrf.mxu2 }
 0x236   :  { %v548_v52 = vadd.f32 %v547_v46, %v509_v49 }
 0x238   :  { %v561_v56 = vadd.f32 %v560_v53, %v548_v52 }
 0x23d   :  { %v549_v55 = vpop.f32.mrf.mxu2 }
 0x23e   :  { %v550_v57 = vadd.f32 %v549_v55, %v514_v54 }
 0x240   :  { %v562_v58 = vadd.f32 %v561_v56, %v550_v57  ;;  %v672_v56 = vpop.permute.xlu0 %671 }
 0x242   :  { %v563_v59 = vrot.slane %v562_v58, 4 }
 0x244   :  { %v564_v60 = vadd.f32 %v563_v59, %v562_v58  ;;  %v677_v59 = vpop.permute.xlu1 %676 }
 0x246   :  { %v565_v61 = vrot.slane %v564_v60, 2 }
 0x248   :  { %v566_v62 = vadd.f32 %v565_v61, %v564_v60 }
 0x24a   :  { %v567_v63 = vrot.slane %v566_v62, 1 }
 0x24c   :  { %v568_v0 = vadd.f32 %v567_v63, %v566_v62 }
 0x24e   :  { %v569_v1 = vmul.f32 %v568_v0, %v1065_v50 }
 0x250   :  { %v570_v2 = vsub.f32 %v543_v51, %v569_v1  ;;  %v571_v3 = vsub.f32 %v545_v48, %v569_v1  ;;  %v572_v4 = vsub.f32 %v548_v52, %v569_v1  ;;  %v573_v5 = vsub.f32 %v550_v57, %v569_v1  ;;  %v667_v52 = vpop.permute.xlu2 %666 }
 0x252   :  { %v574_v6 = vmul.f32 %v570_v2, %v570_v2  ;;  %v575_v7 = vmul.f32 %v571_v3, %v571_v3  ;;  %v576_v8 = vmul.f32 %v572_v4, %v572_v4  ;;  %v577_v10 = vmul.f32 %v573_v5, %v573_v5 }
 0x254   :  { %v578_v9 = vadd.f32 %v575_v7, %v574_v6 }
 0x256   :  { %v579_v11 = vadd.f32 %v578_v9, %v576_v8 }
 0x258   :  { %v580_v12 = vadd.f32 %v579_v11, %v577_v10 }
 0x25a   :  { %v581_v13 = vrot.slane %v580_v12, 4 }
 0x25c   :  { %v582_v14 = vadd.f32 %v581_v13, %v580_v12 }
 0x25e   :  { %v583_v15 = vrot.slane %v582_v14, 2 }
 0x260   :  { %v584_v16 = vadd.f32 %v583_v15, %v582_v14 }
 0x262   :  { %v585_v17 = vrot.slane %v584_v16, 1 }
 0x264   :  { %v586_v18 = vadd.f32 %v585_v17, %v584_v16 }
 0x266   :  { %v587_v20 = vmul.f32 %v586_v18, %v1065_v50 }
 0x268   :  { %v588_v22 = vadd.f32 1e-05, %v587_v20 }
 0x26a   :  { %823 = vrsqrt.f32 %v588_v22  ;;  %vm595_vm7 = vweird.f32 %v588_v22 }
 0x270   :  { %v824_v25 = vpop.eup %823 }
 0x271   :  { %v590_v27 = vmul.f32 %v824_v25, %v588_v22  ;;  %vm596_vm6 = vweird.f32 %v824_v25 }
 0x272   :  { %vm597_vm8 = vmor %vm595_vm7, %vm596_vm6 }
 0x273   :  { %v591_v29 = vmul.f32 %v824_v25, %v590_v27 }
 0x275   :  { %v592_v30 = vmul.f32 0.5, %v591_v29 }
 0x277   :  { %v593_v31 = vsub.f32 1.5, %v592_v30 }
 0x279   :  { %v594_v33 = vmul.f32 %v824_v25, %v593_v31 }
 0x27b   :  { %v598_v35 = vsel %vm597_vm8, %v824_v25, %v594_v33 }
 0x27c   :  { %v599_v50 = vmul.f32 %v598_v35, %v570_v2  ;;  %v600_v36 = vmul.f32 %v598_v35, %v571_v3  ;;  %v601_v37 = vmul.f32 %v598_v35, %v572_v4  ;;  %v602_v38 = vmul.f32 %v598_v35, %v573_v5  ;;  %v696_v3 = vpop.permute.xlu2 %695 }
 0x27d   :  { %v698_v5 = vperm.slane %v696_v3, 0 }
 0x27e   :  { %v623_v40 = vmul.f32 %v606_v19, %v599_v50  ;;  %v624_v41 = vmul.f32 %v611_v21, %v600_v36  ;;  %v625_v42 = vmul.f32 %v616_v23, %v601_v37  ;;  %v626_v43 = vmul.f32 %v621_v28, %v602_v38 }
 0x280   :  { %v647_v44 = vadd.f32 %v630_v24, %v623_v40  ;;  %v648_v45 = vadd.f32 %v635_v26, %v624_v41  ;;  %v649_v46 = vadd.f32 %v640_v32, %v625_v42  ;;  %v650_v47 = vadd.f32 %v645_v34, %v626_v43 }
 0x282   :  { %v651_v48 = vmax.f32 %v647_v44, 0.0  ;;  %v652_v49 = vmax.f32 %v648_v45, 0.0  ;;  %v653_v51 = vmax.f32 %v649_v46, 0.0  ;;  %v654_v53 = vmax.f32 %v650_v47, 0.0 }
 0x284   :  { %v679_v54 = vmul.f32 %v662_v39, %v651_v48  ;;  %v680_v55 = vmul.f32 %v667_v52, %v652_v49  ;;  %v681_v57 = vmul.f32 %v672_v56, %v653_v51  ;;  %v682_v60 = vmul.f32 %v677_v59, %v654_v53 }
 0x286   :  { %v683_v58 = vadd.f32 %v680_v55, %v679_v54 }
 0x288   :  { %v684_v61 = vadd.f32 %v683_v58, %v681_v57 }
 0x28a   :  { %v685_v62 = vadd.f32 %v684_v61, %v682_v60 }
 0x28c   :  { %v686_v63 = vrot.slane %v685_v62, 4 }
 0x28e   :  { %v687_v0 = vadd.f32 %v686_v63, %v685_v62 }
 0x290   :  { %v688_v1 = vrot.slane %v687_v0, 2 }
 0x292   :  { %v689_v2 = vadd.f32 %v688_v1, %v687_v0 }
 0x294   :  { %v690_v4 = vrot.slane %v689_v2, 1 }
 0x296   :  { %v691_v6 = vadd.f32 %v690_v4, %v689_v2 }
 0x298   :  { %v699_v7 = vadd.f32 %v698_v5, %v691_v6 }
 0x29a   :  { %v794_v8 = vmul.f32 -1.442695, %v699_v7 }
 0x29c   :  { %825 = vpow2.f32 %v794_v8 }
 0x2a2   :  { %v826_v9 = vpop.eup %825 }
 0x2a3   :  { %v703_v10 = vadd.f32 1.0, %v826_v9 }
 0x2a5   :  { %827 = vrcp.f32 %v703_v10  ;;  %v715_v14 = vand.u32 2147483648, %v703_v10  ;;  %v713_v16 = vand.u32 2147483647, %v703_v10  ;;  %vm709_vm10 = vweird.f32 %v703_v10 }
 0x2a7   :  { %v716_v18 = vor.u32 1.1754944e-38, %v715_v14  ;;  %vm714_vm12 = vcmp.eq.f32.partialorder %v713_v16, 8.507059e+37 }
 0x2ab   :  { %v828_v11 = vpop.eup %827 }
 0x2ac   :  { %v705_v12 = vmul.f32 %v828_v11, %v703_v10  ;;  %vm710_vm9 = vweird.f32 %v828_v11 }
 0x2ad   :  { %vm711_vm11 = vmor %vm709_vm10, %vm710_vm9 }
 0x2ae   :  { %v706_v13 = vsub.f32 1.0, %v705_v12 }
 0x2b0   :  { %v707_v15 = vmul.f32 %v828_v11, %v706_v13 }
 0x2b2   :  { %v708_v17 = vadd.f32 %v828_v11, %v707_v15 }
 0x2b4   :  { %v712_v19 = vsel %vm711_vm11, %v828_v11, %v708_v17 }
 0x2b5   :  { %v717_v20 = vsel %vm714_vm12, %v716_v18, %v712_v19 }
 0x2b6   :  { %719 = vst [vmem:[#allocation4] sm:$0x1] %v717_v20 }
 0x2b7   :  { %730 = dma.vmem_to_hbm [thread:$0]  %s726_s29, 16, %s728_s1, [#allocation5]  }
 0x2b8   :  { %853 = dma.done.wait [#allocation5], 16  }
 0x2b9   :  { %854 = vsyncadd [#allocation5], 4294967280 }
 0x2ba   :  { %735 = vsyncpa [#allocation5], 1 }

</bundles_post_ra>
